<compile_context>
chip_gen: v7x
topology: tpu7x:2x2x1
jax: 0.10.0
libtpu: 0.0.40
codegen_flags: <defaults>
</compile_context>

<pallas_src>
import jax
import jax.numpy as jnp
import numpy as np
from jax.experimental import pallas as pl
from jax.experimental.pallas import tpu as pltpu


def _drop_path_kernel(scale_ref, x_ref, o_ref):
    """scale_ref: (N, 1, 1) per-sample keep factor (x.dtype), VMEM.
    x_ref / o_ref: (N, tile_r, lane) lane-dense tile of the input, VMEM."""
    o_ref[...] = x_ref[...] * scale_ref[...]


def drop_path_pallas(x, drop_prob: float = 0.0, training: bool = False, *, key=None):
    """DropPath / stochastic depth, per-sample (batch axis = axis 0)."""
    # Identity fast path — identical to the PyTorch module (no kernel launch).
    if drop_prob == 0.0 or not training:
        return x
    if key is None:
        raise ValueError("drop_path_pallas: a jax PRNG `key` is required in training mode")

    keep_prob = 1.0 - float(drop_prob)
    N = x.shape[0]
    L = 1
    for d in x.shape[1:]:
        L *= d

    # Per-sample keep mask, drawn once (PyTorch: floor(keep_prob + U[0,1))).
    u = jax.random.uniform(key, (N,), dtype=jnp.float32)
    mask = jnp.floor(keep_prob + u)                       # 1.0 keep / 0.0 drop
    scale = (mask * (1.0 / keep_prob)).astype(x.dtype).reshape(N, 1, 1)

    # Lane-dense working view: pack each sample into full (8, 128) vregs.
    if L % 128 == 0:
        lane = 128
        R = L // 128
    else:
        lane = L                                          # full-dim lane fallback
        R = 1
    x3 = x.reshape(N, R, lane)

    # Tile sizing: ~2 MiB of input per grid step (plus equal output traffic),
    # sublane-aligned rows.  Tiny problems collapse to a single grid step.
    itemsize = jnp.dtype(x.dtype).itemsize
    bytes_per_row = max(N * lane * itemsize, 1)
    target_rows = max(8, ((2 * 1024 * 1024) // bytes_per_row) // 8 * 8)
    if R <= target_rows:
        tile_r = R
        grid_r = 1
    else:
        tile_r = target_rows
        grid_r = pl.cdiv(R, tile_r)

    out3 = pl.pallas_call(
        _drop_path_kernel,
        out_shape=jax.ShapeDtypeStruct((N, R, lane), x.dtype),
        grid=(grid_r,),
        in_specs=[
            pl.BlockSpec((N, 1, 1), lambda r: (0, 0, 0)),        # per-sample scale
            pl.BlockSpec((N, tile_r, lane), lambda r: (0, r, 0)),  # x tile
        ],
        out_specs=pl.BlockSpec((N, tile_r, lane), lambda r: (0, r, 0)),
        compiler_params=pltpu.CompilerParams(
            dimension_semantics=("parallel",),
        ),
    )(scale, x3)
    return out3.reshape(x.shape)


if __name__ == "__main__":
    # Shapes consistent with the module's usage: NCHW, batch=2, channels=4, 16x16.
    N, C, H, W = 2, 4, 16, 16
    key = jax.random.PRNGKey(0)
    kx, kmask = jax.random.split(key, 2)
    x = jax.random.normal(kx, (N, C, H, W), jnp.float32)

    # --- eval mode: identity (matches PyTorch fast path, no kernel launched) ---
    out_eval = jax.block_until_ready(drop_path_pallas(x, drop_prob=0.3, training=False))
    np.testing.assert_allclose(np.asarray(out_eval), np.asarray(x))

    # --- training mode: per-sample stochastic depth via the Pallas kernel ---
    drop_prob = 0.35
    keep_prob = 1.0 - drop_prob
    out_train = jax.block_until_ready(
        drop_path_pallas(x, drop_prob=drop_prob, training=True, key=kmask)
    )

    x_np = np.asarray(x)
    out_np = np.asarray(out_train)
    for n in range(N):
        kept = np.allclose(out_np[n], x_np[n] / keep_prob, rtol=1e-5, atol=1e-5)
        dropped = np.allclose(out_np[n], 0.0, atol=1e-7)
        assert kept or dropped, f"sample {n}: not a valid per-sample drop-path output"

    # Determinism: same key -> identical masks / output.
    out_train2 = jax.block_until_ready(
        drop_path_pallas(x, drop_prob=drop_prob, training=True, key=kmask)
    )
    np.testing.assert_allclose(out_np, np.asarray(out_train2))

    print("KERNEL_OK")
</pallas_src>

<mosaic_0001>
module attributes {stable_mosaic.version = 11 : i64} {
  func.func @_drop_path_kernel(%arg0: i32, %arg1: memref<2x1x1xf32, #tpu.memory_space<vmem>>, %arg2: memref<2x8x128xf32, #tpu.memory_space<vmem>>, %arg3: memref<2x8x128xf32, #tpu.memory_space<vmem>>) attributes {dimension_semantics = [#tpu.dimension_semantics<parallel>], iteration_bounds = array<i64: 1>, scalar_prefetch = 0 : i64, scratch_operands = 0 : i64, tpu.core_type = #tpu.core_type<tc>, window_params = [{pipeline_mode = #tpu.pipeline_mode<synchronous>, transform_indices = @transform_0, window_bounds = array<i64: 2, 1, 1>}, {transform_indices = @transform_1, window_bounds = array<i64: 2, 8, 128>}, {transform_indices = @transform_2, window_bounds = array<i64: 2, 8, 128>}]} {
    %c0 = arith.constant 0 : index
    %c0_0 = arith.constant 0 : index
    %c0_1 = arith.constant 0 : index
    %0 = vector.load %arg2[%c0, %c0_0, %c0_1] : memref<2x8x128xf32, #tpu.memory_space<vmem>>, vector<2x8x128xf32>
    %c0_2 = arith.constant 0 : index
    %c0_3 = arith.constant 0 : index
    %c0_4 = arith.constant 0 : index
    %1 = vector.load %arg1[%c0_2, %c0_3, %c0_4] : memref<2x1x1xf32, #tpu.memory_space<vmem>>, vector<2x1x1xf32>
    %2 = vector.broadcast %1 : vector<2x1x1xf32> to vector<2x8x128xf32>
    %3 = arith.mulf %0, %2 : vector<2x8x128xf32>
    %c0_5 = arith.constant 0 : index
    %c0_6 = arith.constant 0 : index
    %c0_7 = arith.constant 0 : index
    %4 = vector.load %arg3[%c0_5, %c0_6, %c0_7] : memref<2x8x128xf32, #tpu.memory_space<vmem>>, vector<2x8x128xf32>
    tpu.vector_store %arg3[%c0_5, %c0_6, %c0_7], %3 {strides = array<i32>} : memref<2x8x128xf32, #tpu.memory_space<vmem>>, vector<2x8x128xf32>,
    return
  }
  func.func @transform_0(%arg0: i32) -> (i32, i32, i32) {
    %c0_i32 = arith.constant 0 : i32
    %c0_i32_0 = arith.constant 0 : i32
    %c0_i32_1 = arith.constant 0 : i32
    %c0_i32_2 = arith.constant 0 : i32
    return %c0_i32, %c0_i32_0, %c0_i32_1 : i32, i32, i32
  }
  func.func @transform_1(%arg0: i32) -> (i32, i32, i32) {
    %c0_i32 = arith.constant 0 : i32
    %c0_i32_0 = arith.constant 0 : i32
    %c0_i32_1 = arith.constant 0 : i32
    return %c0_i32, %arg0, %c0_i32_0 : i32, i32, i32
  }
  func.func @transform_2(%arg0: i32) -> (i32, i32, i32) {
    %c0_i32 = arith.constant 0 : i32
    %c0_i32_0 = arith.constant 0 : i32
    %c0_i32_1 = arith.constant 0 : i32
    return %c0_i32, %arg0, %c0_i32_0 : i32, i32, i32
  }
}

</mosaic_0001>

<bundles_post_ra>
// kernel: tpu_custom_call.1
= control target key start
LH: loop header
LB: loop body
LE: loop exit
PB: predicated region body
PF: predicated region fallthrough
CT: control target
= control target key end

     0   :  { %7 = vsyncpa [#allocation3], 0  ;;  %s181_s0 = inlined_call_operand.vmem [shape: f32[2,1,1], index: 0, kind: input, shape index: {}]   ;;  %s182_s1 = inlined_call_operand.hbm [shape: f32[2,8,128], index: 1, kind: input, shape index: {}]   ;;  %s183_s2 = inlined_call_operand.hbm [shape: f32[2,8,128], index: 2, kind: output, shape index: {}]  }
   0x1   :  { %8 = vsyncpa [#allocation4], 0  ;;  %s125_s9 = smov [#allocation2]   ;;  %s77_s13 = scalar_lea.hbm %s182_s1, 256 }
   0x2   :  { %s16_s10 = sshll.u32 %s125_s9, 4  ;;  %p78_p0 = scmp.ne.s32.totalorder %s182_s1, %s77_s13  ;;  %s17_s10 = int_to_ptr.vmem [resolvable:$true] %s16_s10 }
   0x3   :  { %p81_p1 = scmp.lt.u32.totalorder %s77_s13, %s182_s1 }
   0x5   :  { %p83_p2 = pnand %p81_p1, %p78_p0 }
   0x7   :  { %86 = shalt.err (!%p83_p2)
}
   0x8   :  { %s87_s18 = scalar_lea.vmem %s17_s10, 256  ;;  %p92_p4 = scmp.lt.s32.totalorder %s17_s10, %s17_s10 }
   0x9   :  { %p88_p3 = scmp.ne.s32.totalorder %s17_s10, %s87_s18  ;;  %p93_p5 = scmp.lt.s32.totalorder %s87_s18, %s87_s18 }
   0xb   :  { %p94_p6 = por %p93_p5, %p92_p4 }
   0xd   :  { %p95_p7 = pnand %p94_p6, %p88_p3 }
   0xf   :  { %98 = shalt.err (!%p95_p7)
}
  0x10   :  { %s126_s19 = smov 128   ;;  %s127_s20 = smov 8  }
  0x11   :  { %22 = dma.hbm_to_vmem [thread:$0]  %s182_s1, 256, %s17_s10, [#allocation3], %s126_s19, %s126_s19, %s127_s20  }
  0x12   :  { %121 = dma.done.wait [#allocation3], 256  }
  0x13   :  { %122 = vsyncadd [#allocation3], 4294967040  ;;  %v128_v0 = vmov 0   ;;  %v69_v1 = vld [vmem:[%s181_s0] ss:$0 sm:$0xff]  ;;  %v27_v6 = vld [vmem:[#allocation2 + $0x8] sm:$0xff] }
  0x14   :  { %76 = vset.pattern.permute.xlu0 %v128_v0  ;;  %v70_v2 = vld [vmem:[%s181_s0 + $0x1] ss:$0 sm:$0xff]  ;;  %s129_s27 = smov [#allocation5]  }
  0x15   :  { %41 = vperm.xlu0 %76, %v69_v1   ;;  %v26_v3 = vld [vmem:[#allocation2] sm:$0xff]  ;;  %s57_s1 = sshll.u32 %s129_s27, 4  ;;  %s58_s1 = int_to_ptr.vmem [resolvable:$true] %s57_s1 }
  0x16   :  { %s99_s28 = scalar_lea.vmem %s58_s1, 256  ;;  %p104_p9 = scmp.lt.s32.totalorder %s58_s1, %s58_s1 }
  0x17   :  { %p100_p8 = scmp.ne.s32.totalorder %s58_s1, %s99_s28  ;;  %p105_p10 = scmp.lt.s32.totalorder %s99_s28, %s99_s28 }
  0x19   :  { %45 = vperm.xlu0 %76, %v70_v2   ;;  %p106_p11 = por %p105_p10, %p104_p9 }
  0x1b   :  { %p107_p12 = pnand %p106_p11, %p100_p8 }
  0x94   :  { %v42_v4 = vpop.permute.xlu0 %41 }
  0x95   :  { %v48_v5 = vmul.f32 %v42_v4, %v26_v3 }
  0x97   :  { %50 = vst [vmem:[#allocation5] sm:$0xff] %v48_v5 }
  0x98   :  { %v46_v7 = vpop.permute.xlu0 %45 }
  0x99   :  { %v49_v8 = vmul.f32 %v46_v7, %v27_v6 }
  0x9b   :  { %51 = vst [vmem:[#allocation5 + $0x8] sm:$0xff] %v49_v8 }
  0x9c   :  { %110 = shalt.err (!%p107_p12)
}
  0x9d   :  { %s111_s30 = scalar_lea.hbm %s183_s2, 256 }
  0x9e   :  { %p112_p13 = scmp.ne.s32.totalorder %s183_s2, %s111_s30  ;;  %p115_p0 = scmp.lt.u32.totalorder %s111_s30, %s183_s2 }
  0xa0   :  { %p117_p1 = pnand %p115_p0, %p112_p13 }
  0xa2   :  { %120 = shalt.err (!%p117_p1)
}
  0xa3   :  { %63 = dma.vmem_to_hbm [thread:$0]  %s58_s1, 256, %s183_s2, [#allocation4], %s126_s19, %s126_s19, %s127_s20  }
  0xa4   :  { %123 = dma.done.wait [#allocation4], 256  }
  0xa5   :  { %124 = vsyncadd [#allocation4], 4294967040 }
  0xa6   :  { %67 = vsyncpa [#allocation3], 1 }
  0xa7   :  { %68 = vsyncpa [#allocation4], 1 }

</bundles_post_ra>
